<compile_context>
chip_gen: v7x
topology: tpu7x:2x2x1
jax: 0.10.0
libtpu: 0.0.40
codegen_flags: <defaults>
</compile_context>

<pallas_src>
import functools

import jax
import jax.numpy as jnp
import numpy as np
from jax.experimental import pallas as pl
from jax.experimental.pallas import tpu as pltpu


# --------------------------------------------------------------------------- #
# Window-count matrix (folds replication padding, stride and the window sum). #
# --------------------------------------------------------------------------- #
def _window_matrix(seq_len, kernel_size, stride):
    """(L_out, L) window-count matrix folding in replication padding + stride."""
    pad = (kernel_size - 1) // 2
    l_out = (seq_len + 2 * pad - kernel_size) // stride + 1
    a = np.zeros((l_out, seq_len), dtype=np.float32)
    for t in range(l_out):
        for k in range(kernel_size):
            j = min(max(t * stride + k - pad, 0), seq_len - 1)
            a[t, j] += 1.0
    return a, l_out


# --------------------------------------------------------------------------- #
# VMEM sizing helpers.                                                        #
# --------------------------------------------------------------------------- #
def _tpu_vmem_capacity_bytes():
    try:
        return int(pltpu.get_tpu_info().vmem_capacity_bytes)
    except Exception:
        return 64 * 1024 * 1024  # conservative fallback (v7x per-TC VMEM)


def _vmem_budget_bytes():
    # ~75% of physical VMEM for the pipelined working set
    # (2x A + 2x x_tile + 2x out_tile); the rest is compiler headroom.
    return (3 * _tpu_vmem_capacity_bytes()) // 4


def _vmem_limit_bytes(needed):
    cap = _tpu_vmem_capacity_bytes()
    return int(min(cap, max(needed + (4 << 20), 32 << 20)))


# --------------------------------------------------------------------------- #
# Tile picking.                                                               #
# --------------------------------------------------------------------------- #
def _pick_tiles_2d(l_out, seq_len, n_cols, a_bytes, itemsize, budget):
    """Pick (t_lout, tn) for the out(L_out, N) = A(L_out, L) @ x(L, N) path."""

    def fits(tl, tn):
        return (2 * a_bytes
                + 2 * seq_len * tn * itemsize
                + 2 * tl * tn * itemsize) <= budget

    # Column tiles must stay lane dense: multiples of 128 (or the full width).
    tn_cands = [n_cols]
    if n_cols % 128 == 0:
        tn_cands += [d for d in range(n_cols - 128, 0, -128) if n_cols % d == 0]
    # Row tiles must stay sublane aligned: multiples of 8 (or the full height).
    tl_cands = [l_out]
    if l_out % 8 == 0:
        tl_cands += [d for d in range(l_out - 8, 0, -8) if l_out % d == 0]

    t_lout, tn = tl_cands[-1], tn_cands[-1]  # fallback: smallest legal tiles
    done = False
    for tl in tl_cands:            # shrink the column tile before the row tile
        for cand in tn_cands:
            if fits(tl, cand):
                t_lout, tn = tl, cand
                done = True
                break
        if done:
            break

    # Guarantee >= 2 grid steps so both v7x TensorCores get work.
    if (n_cols // tn) * (l_out // t_lout) < 2:
        if n_cols % 256 == 0:
            tn = n_cols // 2            # still a multiple of 128
        elif l_out % 16 == 0:
            t_lout = l_out // 2         # still a multiple of 8
    return t_lout, tn


def _pick_tiles_3d(batch, seq_len, l_out, channels, a_bytes, itemsize, budget):
    """Pick (tb, tc) for the native (B, L, C) path (used when C >= 128)."""

    def fits(tb, tc):
        return (2 * a_bytes
                + 2 * tb * seq_len * tc * itemsize
                + 2 * tb * l_out * tc * itemsize) <= budget

    tc_cands = [channels]
    if channels % 128 == 0:
        tc_cands += [d for d in range(channels - 128, 0, -128) if channels % d == 0]
    tc = tc_cands[-1]
    for d in tc_cands:
        if fits(1, d):
            tc = d
            break

    # Cap tb so the grid keeps >= 2 steps (megacore) when C is a single tile.
    tb_max = batch
    if batch >= 2 and channels // tc == 1:
        tb_max = max(1, batch // 2)
    tb = 1
    for d in range(tb_max, 0, -1):
        if batch % d == 0 and fits(d, tc):
            tb = d
            break
    return tb, tc


# --------------------------------------------------------------------------- #
# Kernels.                                                                    #
# --------------------------------------------------------------------------- #
def _mavg_kernel_2d(a_ref, x_ref, o_ref, *, inv_k, cast_bf16):
    # a_ref: (t_lout, L) window-count rows, x_ref: (L, tn), o_ref: (t_lout, tn)
    a = a_ref[...]
    x = x_ref[...]
    if cast_bf16:
        a = a.astype(jnp.bfloat16)
        x = x.astype(jnp.bfloat16)
    acc = jnp.dot(a, x, preferred_element_type=jnp.float32)
    o_ref[...] = (acc * inv_k).astype(o_ref.dtype)


def _mavg_kernel_3d(a_ref, x_ref, o_ref, *, inv_k, cast_bf16):
    # a_ref: (l_out, L), x_ref: (tb, L, tc), o_ref: (tb, l_out, tc)
    a = a_ref[...]
    if cast_bf16:
        a = a.astype(jnp.bfloat16)

    def body(b, carry):
        xb = x_ref[b]
        if cast_bf16:
            xb = xb.astype(jnp.bfloat16)
        acc = jnp.dot(a, xb, preferred_element_type=jnp.float32)
        o_ref[b] = (acc * inv_k).astype(o_ref.dtype)
        return carry

    jax.lax.fori_loop(0, x_ref.shape[0], body, 0, unroll=True)


# --------------------------------------------------------------------------- #
# Public wrapper (matches the PyTorch moving_avg.forward).                    #
# --------------------------------------------------------------------------- #
def moving_avg(x, kernel_size, stride, *, bf16_matmul=False):
    """x: (B, L, C) -> (B, L_out, C), matching the PyTorch moving_avg module."""
    B, L, C = x.shape
    a_np, l_out = _window_matrix(L, kernel_size, stride)

    cast_bf16 = bool(bf16_matmul) and x.dtype == jnp.float32
    a_dtype = jnp.bfloat16 if cast_bf16 else x.dtype
    a = jnp.asarray(a_np, dtype=a_dtype)

    x_item = jnp.dtype(x.dtype).itemsize
    a_bytes = l_out * L * jnp.dtype(a_dtype).itemsize
    budget = _vmem_budget_bytes()

    inv_k = 1.0 / float(kernel_size)
    kern2d = functools.partial(_mavg_kernel_2d, inv_k=inv_k, cast_bf16=cast_bf16)
    kern3d = functools.partial(_mavg_kernel_3d, inv_k=inv_k, cast_bf16=cast_bf16)

    if C < 128:
        # ----- Lane-dense 2-D path (narrow channels, e.g. Autoformer C=7..64).
        N = B * C
        x2d = jnp.transpose(x, (1, 0, 2)).reshape(L, N)
        t_lout, tn = _pick_tiles_2d(l_out, L, N, a_bytes, x_item, budget)
        needed = 2 * a_bytes + 2 * L * tn * x_item + 2 * t_lout * tn * x_item
        out2d = pl.pallas_call(
            kern2d,
            out_shape=jax.ShapeDtypeStruct((l_out, N), x.dtype),
            grid_spec=pltpu.PrefetchScalarGridSpec(
                num_scalar_prefetch=0,
                # N tiles outer / L_out tiles inner: the x block index depends
                # only on the outer axis, so x is fetched from HBM once per
                # column tile (not once per grid step).
                grid=(N // tn, l_out // t_lout),
                in_specs=[
                    pl.BlockSpec((t_lout, L), lambda j, i: (i, 0)),
                    pl.BlockSpec((L, tn), lambda j, i: (0, j)),
                ],
                out_specs=pl.BlockSpec((t_lout, tn), lambda j, i: (i, j)),
            ),
            compiler_params=pltpu.CompilerParams(
                dimension_semantics=("parallel", "parallel"),
                vmem_limit_bytes=_vmem_limit_bytes(needed),
            ),
        )(a, x2d)
        return jnp.transpose(out2d.reshape(l_out, B, C), (1, 0, 2))

    # ----- Wide-channel path: native (B, L, C) layout, C already lane dense.
    tb, tc = _pick_tiles_3d(B, L, l_out, C, a_bytes, x_item, budget)
    needed = 2 * a_bytes + 2 * tb * L * tc * x_item + 2 * tb * l_out * tc * x_item
    return pl.pallas_call(
        kern3d,
        out_shape=jax.ShapeDtypeStruct((B, l_out, C), x.dtype),
        grid_spec=pltpu.PrefetchScalarGridSpec(
            num_scalar_prefetch=0,
            grid=(B // tb, C // tc),
            in_specs=[
                pl.BlockSpec((l_out, L), lambda i, j: (0, 0)),
                pl.BlockSpec((tb, L, tc), lambda i, j: (i, 0, j)),
            ],
            out_specs=pl.BlockSpec((tb, l_out, tc), lambda i, j: (i, 0, j)),
        ),
        compiler_params=pltpu.CompilerParams(
            dimension_semantics=("parallel", "parallel"),
            vmem_limit_bytes=_vmem_limit_bytes(needed),
        ),
    )(a, x)


# --------------------------------------------------------------------------- #
# Self-test.                                                                  #
# --------------------------------------------------------------------------- #
if __name__ == "__main__":
    key = jax.random.PRNGKey(0)

    def reference(x, kernel_size, stride):
        pad = (kernel_size - 1) // 2
        xp = jnp.concatenate(
            [jnp.repeat(x[:, :1, :], pad, axis=1), x,
             jnp.repeat(x[:, -1:, :], pad, axis=1)], axis=1)
        l_out = (x.shape[1] + 2 * pad - kernel_size) // stride + 1
        return jnp.stack(
            [xp[:, t * stride:t * stride + kernel_size, :].mean(axis=1)
             for t in range(l_out)], axis=1)

    # Narrow-channel (lane-dense 2-D) path — the Autoformer regime.
    B, L, C = 2, 16, 32
    x = jax.random.normal(key, (B, L, C), dtype=jnp.float32)
    for kernel_size, stride in [(5, 1), (7, 2)]:
        out = jax.block_until_ready(moving_avg(x, kernel_size, stride))
        ref = reference(x, kernel_size, stride)
        assert out.shape == ref.shape, (out.shape, ref.shape)
        assert jnp.allclose(out, ref, atol=1e-5, rtol=1e-5), (kernel_size, stride)

    # Wide-channel (native 3-D) path.
    xw = jax.random.normal(jax.random.PRNGKey(1), (2, 16, 128), dtype=jnp.float32)
    outw = jax.block_until_ready(moving_avg(xw, 5, 1))
    refw = reference(xw, 5, 1)
    assert outw.shape == refw.shape, (outw.shape, refw.shape)
    assert jnp.allclose(outw, refw, atol=1e-5, rtol=1e-5)

    # Optional bf16-operand matmul (f32 accumulation) — looser tolerance.
    outb = jax.block_until_ready(moving_avg(x, 5, 1, bf16_matmul=True))
    refb = reference(x, 5, 1)
    assert jnp.allclose(outb, refb, atol=5e-2, rtol=5e-2)

    print("KERNEL_OK")
</pallas_src>

<mosaic_0001>
module attributes {stable_mosaic.version = 11 : i64} {
  func.func @_mavg_kernel_2d(%arg0: i32, %arg1: i32, %arg2: memref<8x16xf32, #tpu.memory_space<vmem>>, %arg3: memref<16x64xf32, #tpu.memory_space<vmem>>, %arg4: memref<8x64xf32, #tpu.memory_space<vmem>>) attributes {dimension_semantics = [#tpu.dimension_semantics<parallel>, #tpu.dimension_semantics<parallel>], iteration_bounds = array<i64: 1, 2>, scalar_prefetch = 0 : i64, scratch_operands = 0 : i64, tpu.core_type = #tpu.core_type<tc>, window_params = [{transform_indices = @transform_0, window_bounds = array<i64: 8, 16>}, {transform_indices = @transform_1, window_bounds = array<i64: 16, 64>}, {transform_indices = @transform_2, window_bounds = array<i64: 8, 64>}]} {
    %c0 = arith.constant 0 : index
    %c0_0 = arith.constant 0 : index
    %0 = vector.load %arg2[%c0, %c0_0] : memref<8x16xf32, #tpu.memory_space<vmem>>, vector<8x16xf32>
    %c0_1 = arith.constant 0 : index
    %c0_2 = arith.constant 0 : index
    %1 = vector.load %arg3[%c0_1, %c0_2] : memref<16x64xf32, #tpu.memory_space<vmem>>, vector<16x64xf32>
    %cst = arith.constant dense<0.000000e+00> : vector<8x64xf32>
    %2 = tpu.matmul %0, %1, %cst {dimension_numbers = #tpu.dot_dimension_numbers<[1], [0], [0], [1], [0, 0, 1, 1], [], []>} : vector<8x16xf32>, vector<16x64xf32>, vector<8x64xf32> -> vector<8x64xf32>
    %cst_3 = arith.constant 2.000000e-01 : f32
    %3 = vector.broadcast %cst_3 : f32 to vector<8x64xf32>
    %4 = arith.mulf %2, %3 : vector<8x64xf32>
    %c0_4 = arith.constant 0 : index
    %c0_5 = arith.constant 0 : index
    %5 = vector.load %arg4[%c0_4, %c0_5] : memref<8x64xf32, #tpu.memory_space<vmem>>, vector<8x64xf32>
    tpu.vector_store %arg4[%c0_4, %c0_5], %4 {strides = array<i32>} : memref<8x64xf32, #tpu.memory_space<vmem>>, vector<8x64xf32>,
    return
  }
  func.func @transform_0(%arg0: i32, %arg1: i32) -> (i32, i32) {
    %c0_i32 = arith.constant 0 : i32
    %c0_i32_0 = arith.constant 0 : i32
    return %arg1, %c0_i32 : i32, i32
  }
  func.func @transform_1(%arg0: i32, %arg1: i32) -> (i32, i32) {
    %c0_i32 = arith.constant 0 : i32
    %c0_i32_0 = arith.constant 0 : i32
    return %c0_i32, %arg0 : i32, i32
  }
  func.func @transform_2(%arg0: i32, %arg1: i32) -> (i32, i32) {
    %c0_i32 = arith.constant 0 : i32
    return %arg1, %arg0 : i32, i32
  }
}

</mosaic_0001>

<bundles_post_ra>
// kernel: tpu_custom_call.1
= control target key start
LH: loop header
LB: loop body
LE: loop exit
PB: predicated region body
PF: predicated region fallthrough
CT: control target
= control target key end

     0   :  { %7 = vsyncpa [#allocation3], 0  ;;  %s871_s0 = inlined_call_operand.hbm [shape: f32[16,16], index: 0, kind: input, shape index: {}]   ;;  %s872_s1 = inlined_call_operand.hbm [shape: f32[16,64], index: 1, kind: input, shape index: {}]   ;;  %s873_s2 = inlined_call_operand.hbm [shape: f32[16,64], index: 2, kind: output, shape index: {}]  }
   0x1   :  { %9 = vsyncpa [#allocation3 + $0x1], 0 }
   0x2   :  { %10 = vsyncpa [#allocation6], 0 }
   0x3   :  { %11 = vsyncpa [#allocation4], 0 }
   0x4   :  { %13 = vsyncpa [#allocation4 + $0x1], 0  ;;  %s657_s9 = smov 0   ;;  %s659_s10 = smov 0  }
   0x5   :  { %s661_s11 = smov 0   ;;  %s663_s12 = smov 0  }
   0x6   :  { %s665_s13 = smov 0   ;;  %s667_s14 = smov 0  }
   0x7 LB: > { %s381_s15 = sadd.s32 4294967295, %s632_s14   ;;  %s382_s16 = sadd.s32 4294967294, %s632_s14   ;;  %s632_s14 = sphi %s667_s14, %s19_s14   ;;  %s628_s13 = sphi %s665_s13, %s897_s13   ;;  %s624_s12 = sphi %s663_s12, %s896_s12   ;;  %s620_s11 = sphi %s661_s11, %s895_s11   ;;  %s616_s10 = sphi %s659_s10, %s894_s10   ;;  %s612_s9 = sphi %s657_s9, %s893_s9  }
   0x8   : > { %p51_p0 = scmp.ne.s32.totalorder %s616_s10, %s612_s9  ;;  %p691_p1 = scmp.eq.s32.totalorder %s381_s15, 0 }
   0x9   : > { %p695_p2 = scmp.eq.s32.totalorder %s381_s15, 1  ;;  %p109_p3 = scmp.eq.s32.totalorder %s382_s16, 1 }
   0xa   : > { %s878_s17 = scalar_select %p691_p1, 1, 0 }
   0xb   : > { %s879_s18 = scalar_select %p695_p2, 1, 0 }
   0xc   : > { %p701_p4 = por %p691_p1, %p51_p0  ;;  %p383_p5 = scmp.ge.s32.totalorder %s632_s14, 1 }
   0xd   : > { %p706_p6 = por %p109_p3, %p51_p0  ;;  %p116_p7 = scmp.lt.s32.totalorder %s632_s14, 3 }
   0xe   : > { %s880_s19 = scalar_select %p701_p4, 1, 0 }
   0xf   : > { %s881_s20 = scalar_select %p706_p6, 1, 0 }
  0x10   : > { %p711_p8 = pnand %p383_p5, %p116_p7  ;;  %s634_s22 = smov [#allocation5]  }
  0x11   : > { %s130_s23 = sshll.u32 %s634_s22, 4  ;;  %s28_s25 = sadd.s32 1, %s628_s13  ;;  %s131_s23 = int_to_ptr.vmem [resolvable:$true] %s130_s23 }
  0x12   : > { %s882_s21 = scalar_select %p711_p8, 1, 0 }
  0x13   : > { %p418_p9 = pneg %p711_p8  ;;  %s488_s28 = scalar_lea.hbm %s872_s1, 256 }
  0x14   : > { %p489_p12 = scmp.ne.s32.totalorder %s872_s1, %s488_s28  ;;  %p495_p5 = scmp.lt.u32.totalorder %s488_s28, %s872_s1 }
  0x15   : > { %p720_p11 = pnand %p418_p9, %p691_p1 }
  0x17   : > { %p490_p13 = pneg %p720_p11 }
  0x19   : > { %p491_p0 = pnand %p490_p13, %p489_p12 }
  0x1b   : > { %p492_p3 = pneg %p491_p0 }
  0x1d   : > { %p497_p7 = pnand %p495_p5, %p492_p3 }
  0x1f   : > { %500 = shalt.err (!%p497_p7)
}
  0x20   : > { %s501_s5 = scalar_lea.vmem %s131_s23, 256  ;;  %p509_p1 = scmp.lt.s32.totalorder %s131_s23, %s131_s23 }
  0x21   : > { %p502_p9 = scmp.ne.s32.totalorder %s131_s23, %s501_s5  ;;  %p510_p4 = scmp.lt.s32.totalorder %s501_s5, %s501_s5 }
  0x23   : > { %p504_p10 = pnand %p502_p9, %p490_p13  ;;  %p511_p8 = por %p510_p4, %p509_p1 }
  0x25   : > { %p505_p6 = pneg %p504_p10 }
  0x27   : > { %p512_p2 = pnand %p511_p8, %p505_p6 }
  0x29   : > { %515 = shalt.err (!%p512_p2)
}
  0x2a   : > { %s635_s6 = smov 128   ;;  %s636_s7 = smov 8  }
  0x2b   : > { %421 = dma.hbm_to_vmem [thread:$0]  (!%p720_p11), %s872_s1, 256, %s131_s23, [#allocation6], %s635_s6, %s635_s6, %s636_s7  }
  0x2c   : > { %p29_p1 = scmp.ge.s32.totalorder %s28_s25, 2  ;;  %s38_s16 = sadd.s32 1, %s620_s11 }
  0x2d   : > { %p45_p2 = scmp.ne.s32.totalorder %s620_s11, %s616_s10  ;;  %p46_p4 = scmp.eq.s32.totalorder %s632_s14, 0 }
  0x2e   : > { %s899_s25 = smov (%p29_p1, %s28_s25), 0  ;;  %p885_p8 = scmp.ne.s32.totalorder %s879_s18, 0 }
  0x2f   : > { %p747_p6 = por %p46_p4, %p45_p2  ;;  %s35_s24 = ssub.s32 %s628_s13, %s899_s25 }
  0x30   : > { %p753_p10 = por %p885_p8, %p45_p2  ;;  %p431_p12 = scmp.lt.s32.totalorder %s632_s14, 2 }
  0x31   : > { %p36_p11 = scmp.eq.s32.totalorder %s35_s24, 0  ;;  %s144_s23 = sand.u32 1, %s620_s11  }
  0x32   : > { %s386_s27 = sshll.u32 %s144_s23, 3  ;;  %s387_s29 = sshll.u32 %s628_s13, 7 }
  0x33   : > { %s762_s28 = scalar_select %p36_p11, %s620_s11, %s38_s16  }
  0x34   : > { %s768_s4 = scalar_lea.hbm %s871_s0, %s387_s29  ;;  %s148_s18 = scalar_lea.vmem [#allocation2], %s386_s27 }
  0x35   : > { %s155_s5 = sshll.u32 %s148_s18, 4  ;;  %p774_p13 = pnand %p431_p12, %p747_p6  ;;  %s770_s5 = int_to_ptr.vmem [resolvable:$true] %s155_s5 }
  0x36   : > { %s145_s7 = scalar_lea.sflag [#allocation3], %s144_s23  ;;  %s516_s8 = scalar_lea.hbm %s768_s4, 128 }
  0x37   : > { %p517_p0 = scmp.ne.s32.totalorder %s768_s4, %s516_s8  ;;  %p518_p3 = pneg %p774_p13 }
  0x38   : > { %s521_s24 = scalar_lea.hbm %s871_s0, 256  ;;  %p522_p9 = scmp.lt.u32.totalorder %s768_s4, %s871_s0 }
  0x39   : > { %p519_p5 = pnand %p518_p3, %p517_p0  ;;  %p523_p1 = scmp.lt.u32.totalorder %s521_s24, %s516_s8 }
  0x3a   : > { %p525_p4 = scmp.lt.u32.totalorder %s516_s8, %s768_s4 }
  0x3b   : > { %p520_p7 = pneg %p519_p5  ;;  %p524_p2 = por %p523_p1, %p522_p9 }
  0x3d   : > { %p526_p6 = por %p525_p4, %p524_p2 }
  0x3f   : > { %p527_p8 = pnand %p526_p6, %p520_p7 }
  0x41   : > { %530 = shalt.err (!%p527_p8)
}
  0x42   : > { %s531_s23 = scalar_lea.vmem %s770_s5, 128  ;;  %s637_s29 = smov [#allocation2]  }
  0x43   : > { %p532_p12 = scmp.ne.s32.totalorder %s770_s5, %s531_s23  ;;  %s536_s30 = sshll.u32 %s637_s29, 4  ;;  %s537_s30 = int_to_ptr.vmem [resolvable:$false] %s536_s30 }
  0x44   : > { %s538_s3 = scalar_lea.vmem %s537_s30, 256  ;;  %p539_p5 = scmp.lt.s32.totalorder %s770_s5, %s537_s30 }
  0x45   : > { %p534_p11 = pnand %p532_p12, %p518_p3  ;;  %p540_p9 = scmp.lt.s32.totalorder %s538_s3, %s531_s23 }
  0x47   : > { %p535_p0 = pneg %p534_p11  ;;  %p541_p1 = por %p540_p9, %p539_p5 }
  0x49   : > { %p542_p2 = pnand %p541_p1, %p535_p0 }
  0x4b   : > { %545 = shalt.err (!%p542_p2)
}
  0x4c   : > { %425 = dma.hbm_to_vmem [thread:$0]  (!%p774_p13), %s768_s4, 128, %s770_s5, %s145_s7  }
  0x4d   : > { %p888_p7 = scmp.ne.s32.totalorder %s882_s21, 0 }
  0x4e   : > { %s806_s18 = sand.u32 (!%p888_p7), 1, %s616_s10   ;;  %p889_p3 = scmp.ne.s32.totalorder (!%p888_p7), %s880_s19, 0 }
  0x4f   : > { %164 = sbr.rel (%p888_p7) target bundleno = 325 (0x145), region = 28  ;;  %s389_s8 = sshll.u32 (!%p888_p7), %s806_s18, 3 }
  0x50   : > { %s167_s15 = scalar_lea.sflag (!%p888_p7), [#allocation3], %s806_s18  ;;  %s170_s16 = scalar_lea.vmem (!%p888_p7), [#allocation2], %s389_s8 }
  0x56   : > { %599 = dma.done.wait (%p889_p3), %s167_s15, 128  }
  0x57   : > { %601 = vsyncadd (%p889_p3), %s167_s15, 4294967168  ;;  %p890_p4 = scmp.ne.s32.totalorder %s878_s17, 0 }
  0x59   : > { %603 = dma.done.wait (%p890_p4), [#allocation6], 256  }
  0x5a   : > { %605 = vsyncadd (%p890_p4), [#allocation6], 4294967040  ;;  %v638_v0 = vmov 0.0|0.0   ;;  %vm639_vm0 = vmmov 0   ;;  %v640_v1 = vmov 0.0   ;;  %v196_v2 = vld [vmem:[#allocation5] sm:$0xff] }
  0x5b   : > { %407 = vmatprep.subr.bf16.mxu0 %v638_v0  ;;  %404 = vmatprep.mubr.msk.f32.mxu0 %vm639_vm0, %v640_v1  ;;  %v197_v3 = vld [vmem:[#allocation5 + $0x8] sm:$0xff]  ;;  %v195_v5 = vld [vmem:[%s170_s16] sm:$0xff]  ;;  %vm198_vm1 = vcmask 130048   ;;  %s394_s19 = sshll.u32 %s624_s12, 7  ;;  %s194_s21 = scalar_lea.vmem [#allocation7], %s389_s8  ;;  %vm273_vm2 = vcmask 523264  }
  0x5c   : > { %v408_v4 = vpack.c.bf16 %v197_v3, %v196_v2  ;;  %s290_s4 = sshll.u32 %s194_s21, 4  ;;  %s822_s6 = scalar_lea.hbm %s873_s2, %s394_s19  ;;  %s824_s4 = int_to_ptr.vmem [resolvable:$true] %s290_s4 }
  0x5d   : > { %s276_s7 = scalar_lea.sflag [#allocation4], %s806_s18  ;;  %s546_s24 = scalar_lea.vmem %s824_s4, 128 }
  0x5e   : > { %409 = vmatpush3.bf16.msra.mxu0 %v408_v4  ;;  %p547_p13 = scmp.ne.s32.totalorder %s824_s4, %s546_s24  ;;  %s641_s12 = smov [#allocation7]  }
  0x5f   : > { %s550_s22 = sshll.u32 %s641_s12, 4  ;;  %s551_s22 = int_to_ptr.vmem [resolvable:$false] %s550_s22 }
  0x60   : > { %p548_p6 = pnand %p547_p13, %p753_p10  ;;  %s552_s27 = scalar_lea.vmem %s551_s22, 256 }
  0x61   : > { %405 = vmatmul.mubr.msk.f32.vlgmr.msra.gmra.mrb[0].mxu0 %vm198_vm1, %v195_v5  ;;  %p553_p12 = scmp.lt.s32.totalorder %s824_s4, %s551_s22  ;;  %p554_p11 = scmp.lt.s32.totalorder %s552_s27, %s546_s24 }
  0x62   : > { %p549_p8 = pneg %p548_p6 }
  0x63   : > { %p555_p0 = por %p554_p11, %p553_p12 }
  0x65   : > { %p556_p5 = pnand %p555_p0, %p549_p8 }
 0x134   : > { %v268_v6 = vpop.f32.mrb[0].mxu0 }
 0x135   : > { %v272_v7 = vmul.f32 0.2, %v268_v6  ;;  %v406_v8 = vpop.f32.mrb[1].mxu0 }
 0x137   : > { %274 = vst.msk [vmem:[%s194_s21] sm:$0xff] %vm273_vm2, %v272_v7 }
 0x138   : > { %559 = shalt.err (!%p556_p5)
}
 0x139   : > { %s560_s23 = scalar_lea.hbm %s822_s6, 128  ;;  %s564_s3 = scalar_lea.hbm %s873_s2, 256 }
 0x13a   : > { %p561_p9 = scmp.ne.s32.totalorder %s822_s6, %s560_s23  ;;  %p565_p7 = scmp.lt.u32.totalorder %s822_s6, %s873_s2 }
 0x13b   : > { %p566_p3 = scmp.lt.u32.totalorder %s564_s3, %s560_s23  ;;  %p568_p13 = scmp.lt.u32.totalorder %s560_s23, %s822_s6 }
 0x13c   : > { %p562_p1 = pnand %p561_p9, %p753_p10 }
 0x13d   : > { %p567_p4 = por %p566_p3, %p565_p7 }
 0x13e   : > { %p563_p2 = pneg %p562_p1 }
 0x13f   : > { %p569_p6 = por %p568_p13, %p567_p4 }
 0x141   : > { %p570_p8 = pnand %p569_p6, %p563_p2 }
 0x143   : > { %573 = shalt.err (!%p570_p8)
}
 0x144   : > { %416 = dma.vmem_to_hbm [thread:$0]  (%p753_p10), %s824_s4, 128, %s822_s6, %s276_s7  }
 0x145 PF: > { %s302_s15 = sand.u32 1, %s612_s9   ;;  %p891_p12 = scmp.ne.s32.totalorder %s881_s20, 0 }
 0x146   : > { %p892_p11 = scmp.ge.s32.totalorder %s632_s14, 2  ;;  %s303_s16 = scalar_lea.sflag [#allocation4], %s302_s15 }
 0x148   : > { %p427_p0 = pnand %p892_p11, %p891_p12 }
 0x14a   : > { %607 = dma.done.wait (!%p427_p0), %s303_s16, 128  }
 0x14b   : > { %609 = vsyncadd (!%p427_p0), %s303_s16, 4294967168  ;;  %s19_s14 = sadd.s32 1, %s632_s14   ;;  %s893_s9 = smov %s616_s10 }
 0x14c   : > { %p16_p5 = scmp.ge.s32.totalorder %s19_s14, 4   ;;  %s894_s10 = smov %s620_s11 }
 0x14d   : > { %s895_s11 = smov %s762_s28  ;;  %s896_s12 = smov %s628_s13 }
 0x14e   : > { %s897_s13 = smov %s899_s25  ;;  %18 = sbr.rel (!%p16_p5) target bundleno = 7 (0x7), region = 78 }
 0x155   :  { %308 = vsyncpa [#allocation3], 1 }
 0x156   :  { %310 = vsyncpa [#allocation3 + $0x1], 1 }
 0x157   :  { %311 = vsyncpa [#allocation6], 1 }
 0x158   :  { %312 = vsyncpa [#allocation4], 1 }
 0x159   :  { %314 = vsyncpa [#allocation4 + $0x1], 1 }

</bundles_post_ra>
